<compile_context>
chip_gen: v7x
topology: tpu7x:2x2x1
jax: 0.10.0
libtpu: 0.0.40
codegen_flags: <defaults>
</compile_context>

<pallas_src>
import functools
import math

import jax
import jax.numpy as jnp
from jax.experimental import pallas as pl
from jax.experimental.pallas import tpu as pltpu


def _sigmoid(x):
    # nn.Sigmoid
    return 1.0 / (1.0 + jnp.exp(-x))


def _rate_rnn_kernel(x_ref, drive_ref, h0_ref, w_ih_ref, w_hh_ref, w_ho_ref,
                     sign_ref, out_ref, hid_ref, h_scr, *, alpha, t_blk):
    """One grid step == one time chunk of `t_blk` steps (serial across chunks)."""
    c = pl.program_id(0)

    @pl.when(c == 0)
    def _():
        h_scr[...] = h0_ref[...]

    B = x_ref.shape[0]
    d_in = x_ref.shape[2]
    H = w_hh_ref.shape[0]

    w_hh = w_hh_ref[...]                     # (H, H)   = W_hh^T
    sign = sign_ref[...]                     # (1, H)   Dale diagonal as a sign row

    # ---- parallel-in-time precompute (off the serial critical path) ----
    # relu(x_t @ W_ih^T) for ALL timesteps in one MXU matmul; W_ih^T is
    # zero-padded over the inhibitory columns so those come out exactly 0.
    x_all = x_ref[...].reshape(B * t_blk, d_in)
    i_exc = jnp.maximum(
        jnp.dot(x_all, w_ih_ref[...], preferred_element_type=jnp.float32), 0.0)
    # total additive per-step input: alpha*I_exc + (alpha*I_inh_osc + noise)
    u_all = (alpha * i_exc).reshape(B, t_blk, H) + drive_ref[...]   # (B, t_blk, H)

    # ---- serial recurrence, fully unrolled (t_blk is static & small) ----
    h = h_scr[...]                           # (B, H) float32 carry
    for k in range(t_blk):
        r = _sigmoid(h)
        i_rec = jnp.maximum(
            jnp.dot(r, w_hh, preferred_element_type=jnp.float32), 0.0) * sign
        h = (1.0 - alpha) * h + alpha * i_rec + u_all[:, k, :]
        hid_ref[:, k, :] = h                 # hidden[:, t, :] = h
    h_scr[...] = h                           # carry to the next time chunk

    # ---- batched output head: Linear_ho + softmax for the whole chunk ----
    # W_ho^T is zero-padded over inhibitory rows, so the full-width matmul
    # equals sigmoid(hidden[:, :, :exc_dim]) @ W_ho^T exactly.
    s = _sigmoid(hid_ref[...]).reshape(B * t_blk, H)
    logits = jnp.dot(s, w_ho_ref[...], preferred_element_type=jnp.float32)
    m = jnp.max(logits, axis=-1, keepdims=True)
    e = jnp.exp(logits - m)
    # exact reciprocal (approx=True would push the divide onto the idle EUP
    # slot, kept exact here for bit-parity with the pure-JAX reference).
    probs = e * pl.reciprocal(jnp.sum(e, axis=-1, keepdims=True))
    out_ref[...] = probs.reshape(B, t_blk, out_ref.shape[2]).astype(out_ref.dtype)


@functools.partial(jax.jit, static_argnames=("dt", "tau", "theta", "t_blk"))
def rate_rnn_forward(x, h, w_ih, w_hh, w_ho, noise, *, dt, tau, theta, t_blk=None):
    """x: (B, SeqN, D_in);  h: (B, 1, H) initial state;  noise: (B, SeqN, H).

    Returns (out (B, SeqN, O), hidden (B, SeqN, H)) like RateRNN_dale_v2.forward.
    """
    B, SeqN, D_in = x.shape
    H = w_hh.shape[0]
    E = w_ih.shape[0]            # exc_dim
    O = w_ho.shape[0]
    inh_dim = H - E
    alpha = float(dt) / float(tau)

    if t_blk is None:
        t_blk = SeqN
    assert SeqN % t_blk == 0 and (t_blk % 8 == 0 or t_blk == SeqN)

    # Weights pre-transposed to (in, out); zero-padded to full hidden width so
    # every in-kernel matmul is full-width (no concat / slice on the serial path).
    w_ih_t = jnp.concatenate(
        [w_ih.T, jnp.zeros((D_in, inh_dim), jnp.float32)], axis=1)      # (D_in, H)
    w_hh_t = w_hh.T                                                     # (H, H)
    w_ho_t = jnp.concatenate(
        [w_ho.T, jnp.zeros((inh_dim, O), jnp.float32)], axis=0)         # (H, O)

    # Dale's diagonal mask == column-wise sign flip.
    sign = jnp.concatenate(
        [jnp.ones((1, E), jnp.float32), -jnp.ones((1, inh_dim), jnp.float32)],
        axis=1)                                                         # (1, H)

    # Oscillatory drive to the inhibitory units, folded together with the
    # gaussian noise into a single additive per-step tensor:
    #   drive[:, t, :E] = noise;  drive[:, t, E:] = noise + alpha*theta*(sin(16*pi*t*dt)+1)
    osc = jnp.asarray(
        [theta * (math.sin(16.0 * math.pi * t * dt) + 1.0) for t in range(SeqN)],
        jnp.float32)                                                    # (SeqN,)
    osc_pad = jnp.concatenate(
        [jnp.zeros((SeqN, E), jnp.float32),
         jnp.broadcast_to(osc[:, None], (SeqN, inh_dim))], axis=1)      # (SeqN, H)
    drive = noise + alpha * osc_pad[None, :, :]                         # (B, SeqN, H)

    h0 = h.reshape(B, H)                     # squeeze the LayerN=1 dim

    kernel = functools.partial(_rate_rnn_kernel, alpha=alpha, t_blk=t_blk)

    out, hidden = pl.pallas_call(
        kernel,
        out_shape=(
            jax.ShapeDtypeStruct((B, SeqN, O), jnp.float32),
            jax.ShapeDtypeStruct((B, SeqN, H), jnp.float32),
        ),
        grid_spec=pltpu.PrefetchScalarGridSpec(
            num_scalar_prefetch=0,
            grid=(SeqN // t_blk,),
            in_specs=[
                pl.BlockSpec((B, t_blk, D_in), lambda c: (0, c, 0)),    # x chunk
                pl.BlockSpec((B, t_blk, H), lambda c: (0, c, 0)),       # drive chunk
                pl.BlockSpec((B, H), lambda c: (0, 0)),                 # h0
                pl.BlockSpec((D_in, H), lambda c: (0, 0)),              # W_ih^T (padded)
                pl.BlockSpec((H, H), lambda c: (0, 0)),                 # W_hh^T
                pl.BlockSpec((H, O), lambda c: (0, 0)),                 # W_ho^T (padded)
                pl.BlockSpec((1, H), lambda c: (0, 0)),                 # Dale sign row
            ],
            out_specs=[
                pl.BlockSpec((B, t_blk, O), lambda c: (0, c, 0)),       # out chunk
                pl.BlockSpec((B, t_blk, H), lambda c: (0, c, 0)),       # hidden chunk
            ],
            scratch_shapes=[pltpu.VMEM((B, H), jnp.float32)],           # h carry
        ),
        compiler_params=pltpu.CompilerParams(
            dimension_semantics=("arbitrary",)),   # recurrence is serial across chunks
    )(x, drive, h0, w_ih_t, w_hh_t, w_ho_t, sign)
    return out, hidden


def rate_rnn_reference(x, h0, w_ih, w_hh, w_ho, noise, *, dt, tau, theta):
    """Pure-JAX mirror of RateRNN_dale_v2.forward (with the same noise tensor).

    The scalar oscillatory drive is broadcast across the batch (the intended
    semantics of the torch.cat in the original module).
    """
    B, SeqN, _ = x.shape
    H = w_hh.shape[0]
    E = w_ih.shape[0]
    inh_dim = H - E
    alpha = dt / tau
    mask = jnp.eye(H, dtype=jnp.float32)
    mask = mask.at[jnp.arange(E, H), jnp.arange(E, H)].set(-1.0)
    h = h0                                   # (B, 1, H)
    hs = []
    for t in range(SeqN):
        i_rec = jnp.maximum(_sigmoid(h) @ w_hh.T, 0.0) @ mask
        i_exc = jnp.maximum(x[:, t:t + 1, :] @ w_ih.T, 0.0)
        i_inh_val = theta * (math.sin(16.0 * math.pi * t * dt) + 1.0)
        i_inh = jnp.full((B, 1, inh_dim), i_inh_val, jnp.float32)
        cur = i_rec + jnp.concatenate([i_exc, i_inh], axis=2)
        h = (1.0 - alpha) * h + alpha * cur + noise[:, t:t + 1, :]
        hs.append(h[:, 0, :])
    hidden = jnp.stack(hs, axis=1)           # (B, SeqN, H)
    logits = _sigmoid(hidden[:, :, :E]) @ w_ho.T
    out = jax.nn.softmax(logits, axis=2)
    return out, hidden


if __name__ == "__main__":
    input_dim, hidden_dim, output_dim = 16, 32, 10
    tau, dt, theta, p_inh = 100.0, 10.0, 0.5, 0.2
    B, SeqN = 2, 8

    inh_dim = int(round(hidden_dim * p_inh))
    exc_dim = hidden_dim - inh_dim

    key = jax.random.PRNGKey(0)
    ks = jax.random.split(key, 6)

    def uinit(k, shape, fan_in):
        bound = 1.0 / math.sqrt(fan_in)
        return jax.random.uniform(k, shape, jnp.float32, -bound, bound)

    # nn.Linear weights (out_features, in_features); all layers have bias=None.
    w_ih = uinit(ks[0], (exc_dim, input_dim), input_dim)        # linear_ih
    w_hh = uinit(ks[1], (hidden_dim, hidden_dim), hidden_dim)   # linear_hh
    w_ho = uinit(ks[2], (output_dim, exc_dim), exc_dim)         # linear_ho

    x = jax.random.normal(ks[3], (B, SeqN, input_dim), jnp.float32)
    h0 = jax.random.normal(ks[4], (B, 1, hidden_dim), jnp.float32)
    # TODO(synk): the per-step torch.randn(h.shape)*0.01 is modeled as a
    # precomputed deterministic noise input (pltpu.prng_* would be the
    # in-kernel alternative, but would not be checkable against a reference).
    noise = 0.01 * jax.random.normal(ks[5], (B, SeqN, hidden_dim), jnp.float32)

    out, hidden = rate_rnn_forward(x, h0, w_ih, w_hh, w_ho, noise,
                                   dt=dt, tau=tau, theta=theta)
    out = jax.block_until_ready(out)
    hidden = jax.block_until_ready(hidden)

    out_exp, hidden_exp = rate_rnn_reference(x, h0, w_ih, w_hh, w_ho, noise,
                                             dt=dt, tau=tau, theta=theta)
    assert out.shape == (B, SeqN, output_dim)
    assert hidden.shape == (B, SeqN, hidden_dim)
    assert jnp.allclose(out, out_exp, atol=1e-3, rtol=1e-3)
    assert jnp.allclose(hidden, hidden_exp, atol=1e-3, rtol=1e-3)

    print("KERNEL_OK")
</pallas_src>

<mosaic_0001>
module attributes {stable_mosaic.version = 11 : i64} {
  func.func @_rate_rnn_kernel(%arg0: i32, %arg1: memref<2x8x16xf32, #tpu.memory_space<vmem>>, %arg2: memref<2x8x32xf32, #tpu.memory_space<vmem>>, %arg3: memref<2x32xf32, #tpu.memory_space<vmem>>, %arg4: memref<16x32xf32, #tpu.memory_space<vmem>>, %arg5: memref<32x32xf32, #tpu.memory_space<vmem>>, %arg6: memref<32x10xf32, #tpu.memory_space<vmem>>, %arg7: memref<1x32xf32, #tpu.memory_space<vmem>>, %arg8: memref<2x8x10xf32, #tpu.memory_space<vmem>>, %arg9: memref<2x8x32xf32, #tpu.memory_space<vmem>>, %arg10: memref<2x32xf32, #tpu.memory_space<vmem>>) attributes {dimension_semantics = [#tpu.dimension_semantics<arbitrary>], iteration_bounds = array<i64: 1>, scalar_prefetch = 0 : i64, scratch_operands = 1 : i64, tpu.core_type = #tpu.core_type<tc>, window_params = [{transform_indices = @transform_0, window_bounds = array<i64: 2, 8, 16>}, {transform_indices = @transform_1, window_bounds = array<i64: 2, 8, 32>}, {pipeline_mode = #tpu.pipeline_mode<synchronous>, transform_indices = @transform_2, window_bounds = array<i64: 2, 32>}, {pipeline_mode = #tpu.pipeline_mode<synchronous>, transform_indices = @transform_3, window_bounds = array<i64: 16, 32>}, {pipeline_mode = #tpu.pipeline_mode<synchronous>, transform_indices = @transform_4, window_bounds = array<i64: 32, 32>}, {pipeline_mode = #tpu.pipeline_mode<synchronous>, transform_indices = @transform_5, window_bounds = array<i64: 32, 10>}, {pipeline_mode = #tpu.pipeline_mode<synchronous>, transform_indices = @transform_6, window_bounds = array<i64: 1, 32>}, {transform_indices = @transform_7, window_bounds = array<i64: 2, 8, 10>}, {transform_indices = @transform_8, window_bounds = array<i64: 2, 8, 32>}]} {
    %c0_i32 = arith.constant 0 : i32
    %0 = arith.cmpi eq, %arg0, %c0_i32 : i32
    %1 = arith.extui %0 : i1 to i32
    %c0_i32_0 = arith.constant 0 : i32
    %2 = arith.cmpi ne, %1, %c0_i32_0 : i32
    scf.if %2 {
      %c0_105 = arith.constant 0 : index
      %c0_106 = arith.constant 0 : index
      %225 = vector.load %arg3[%c0_105, %c0_106] : memref<2x32xf32, #tpu.memory_space<vmem>>, vector<2x32xf32>
      %c0_107 = arith.constant 0 : index
      %c0_108 = arith.constant 0 : index
      %226 = vector.load %arg10[%c0_107, %c0_108] : memref<2x32xf32, #tpu.memory_space<vmem>>, vector<2x32xf32>
      tpu.vector_store %arg10[%c0_107, %c0_108], %225 {strides = array<i32>} : memref<2x32xf32, #tpu.memory_space<vmem>>, vector<2x32xf32>,
    } else {
    }
    %c0 = arith.constant 0 : index
    %c0_1 = arith.constant 0 : index
    %3 = vector.load %arg5[%c0, %c0_1] : memref<32x32xf32, #tpu.memory_space<vmem>>, vector<32x32xf32>
    %c0_2 = arith.constant 0 : index
    %c0_3 = arith.constant 0 : index
    %4 = vector.load %arg7[%c0_2, %c0_3] : memref<1x32xf32, #tpu.memory_space<vmem>>, vector<1x32xf32>
    %c0_4 = arith.constant 0 : index
    %c0_5 = arith.constant 0 : index
    %c0_6 = arith.constant 0 : index
    %5 = vector.load %arg1[%c0_4, %c0_5, %c0_6] : memref<2x8x16xf32, #tpu.memory_space<vmem>>, vector<2x8x16xf32>
    %6 = vector.shape_cast %5 : vector<2x8x16xf32> to vector<16x16xf32>
    %c0_7 = arith.constant 0 : index
    %c0_8 = arith.constant 0 : index
    %7 = vector.load %arg4[%c0_7, %c0_8] : memref<16x32xf32, #tpu.memory_space<vmem>>, vector<16x32xf32>
    %cst = arith.constant dense<0.000000e+00> : vector<16x32xf32>
    %8 = tpu.matmul %6, %7, %cst {dimension_numbers = #tpu.dot_dimension_numbers<[1], [0], [0], [1], [0, 0, 1, 1], [], []>} : vector<16x16xf32>, vector<16x32xf32>, vector<16x32xf32> -> vector<16x32xf32>
    %cst_9 = arith.constant 0.000000e+00 : f32
    %9 = vector.broadcast %cst_9 : f32 to vector<16x32xf32>
    %10 = arith.maximumf %8, %9 : vector<16x32xf32>
    %cst_10 = arith.constant 1.000000e-01 : f32
    %11 = vector.broadcast %cst_10 : f32 to vector<16x32xf32>
    %12 = arith.mulf %11, %10 : vector<16x32xf32>
    %13 = vector.shape_cast %12 : vector<16x32xf32> to vector<2x8x32xf32>
    %c0_11 = arith.constant 0 : index
    %c0_12 = arith.constant 0 : index
    %c0_13 = arith.constant 0 : index
    %14 = vector.load %arg2[%c0_11, %c0_12, %c0_13] : memref<2x8x32xf32, #tpu.memory_space<vmem>>, vector<2x8x32xf32>
    %15 = arith.addf %13, %14 : vector<2x8x32xf32>
    %c0_14 = arith.constant 0 : index
    %c0_15 = arith.constant 0 : index
    %16 = vector.load %arg10[%c0_14, %c0_15] : memref<2x32xf32, #tpu.memory_space<vmem>>, vector<2x32xf32>
    %cst_16 = arith.constant 0.000000e+00 : f32
    %17 = vector.broadcast %cst_16 : f32 to vector<2x32xf32>
    %18 = arith.subf %17, %16 : vector<2x32xf32>
    %19 = math.exp %18 : vector<2x32xf32>
    %cst_17 = arith.constant 1.000000e+00 : f32
    %20 = vector.broadcast %cst_17 : f32 to vector<2x32xf32>
    %21 = arith.addf %20, %19 : vector<2x32xf32>
    %cst_18 = arith.constant 1.000000e+00 : f32
    %22 = vector.broadcast %cst_18 : f32 to vector<2x32xf32>
    %23 = arith.divf %22, %21 : vector<2x32xf32>
    %cst_19 = arith.constant dense<0.000000e+00> : vector<2x32xf32>
    %24 = tpu.matmul %23, %3, %cst_19 {dimension_numbers = #tpu.dot_dimension_numbers<[1], [0], [0], [1], [0, 0, 1, 1], [], []>} : vector<2x32xf32>, vector<32x32xf32>, vector<2x32xf32> -> vector<2x32xf32>
    %cst_20 = arith.constant 0.000000e+00 : f32
    %25 = vector.broadcast %cst_20 : f32 to vector<2x32xf32>
    %26 = arith.maximumf %24, %25 : vector<2x32xf32>
    %27 = vector.broadcast %4 : vector<1x32xf32> to vector<2x32xf32>
    %28 = arith.mulf %26, %27 : vector<2x32xf32>
    %cst_21 = arith.constant 0.899999976 : f32
    %29 = vector.broadcast %cst_21 : f32 to vector<2x32xf32>
    %30 = arith.mulf %29, %16 : vector<2x32xf32>
    %cst_22 = arith.constant 1.000000e-01 : f32
    %31 = vector.broadcast %cst_22 : f32 to vector<2x32xf32>
    %32 = arith.mulf %31, %28 : vector<2x32xf32>
    %33 = arith.addf %30, %32 : vector<2x32xf32>
    %34 = vector.extract_strided_slice %15 {offsets = [0, 0, 0], sizes = [2, 1, 32], strides = [1, 1, 1]} : vector<2x8x32xf32> to vector<2x1x32xf32>
    %35 = vector.shape_cast %34 : vector<2x1x32xf32> to vector<2x32xf32>
    %36 = arith.addf %33, %35 : vector<2x32xf32>
    %c0_23 = arith.constant 0 : index
    %c0_24 = arith.constant 0 : index
    %c0_25 = arith.constant 0 : index
    %37 = vector.load %arg9[%c0_23, %c0_24, %c0_25] : memref<2x8x32xf32, #tpu.memory_space<vmem>>, vector<2x1x32xf32>
    %38 = vector.shape_cast %37 : vector<2x1x32xf32> to vector<2x32xf32>
    %39 = vector.shape_cast %36 : vector<2x32xf32> to vector<2x1x32xf32>
    tpu.vector_store %arg9[%c0_23, %c0_24, %c0_25], %39 {strides = array<i32>} : memref<2x8x32xf32, #tpu.memory_space<vmem>>, vector<2x1x32xf32>,
    %cst_26 = arith.constant 0.000000e+00 : f32
    %40 = vector.broadcast %cst_26 : f32 to vector<2x32xf32>
    %41 = arith.subf %40, %36 : vector<2x32xf32>
    %42 = math.exp %41 : vector<2x32xf32>
    %cst_27 = arith.constant 1.000000e+00 : f32
    %43 = vector.broadcast %cst_27 : f32 to vector<2x32xf32>
    %44 = arith.addf %43, %42 : vector<2x32xf32>
    %cst_28 = arith.constant 1.000000e+00 : f32
    %45 = vector.broadcast %cst_28 : f32 to vector<2x32xf32>
    %46 = arith.divf %45, %44 : vector<2x32xf32>
    %cst_29 = arith.constant dense<0.000000e+00> : vector<2x32xf32>
    %47 = tpu.matmul %46, %3, %cst_29 {dimension_numbers = #tpu.dot_dimension_numbers<[1], [0], [0], [1], [0, 0, 1, 1], [], []>} : vector<2x32xf32>, vector<32x32xf32>, vector<2x32xf32> -> vector<2x32xf32>
    %cst_30 = arith.constant 0.000000e+00 : f32
    %48 = vector.broadcast %cst_30 : f32 to vector<2x32xf32>
    %49 = arith.maximumf %47, %48 : vector<2x32xf32>
    %50 = vector.broadcast %4 : vector<1x32xf32> to vector<2x32xf32>
    %51 = arith.mulf %49, %50 : vector<2x32xf32>
    %cst_31 = arith.constant 0.899999976 : f32
    %52 = vector.broadcast %cst_31 : f32 to vector<2x32xf32>
    %53 = arith.mulf %52, %36 : vector<2x32xf32>
    %cst_32 = arith.constant 1.000000e-01 : f32
    %54 = vector.broadcast %cst_32 : f32 to vector<2x32xf32>
    %55 = arith.mulf %54, %51 : vector<2x32xf32>
    %56 = arith.addf %53, %55 : vector<2x32xf32>
    %57 = vector.extract_strided_slice %15 {offsets = [0, 1, 0], sizes = [2, 1, 32], strides = [1, 1, 1]} : vector<2x8x32xf32> to vector<2x1x32xf32>
    %58 = vector.shape_cast %57 : vector<2x1x32xf32> to vector<2x32xf32>
    %59 = arith.addf %56, %58 : vector<2x32xf32>
    %c0_33 = arith.constant 0 : index
    %c1 = arith.constant 1 : index
    %c0_34 = arith.constant 0 : index
    %60 = vector.load %arg9[%c0_33, %c1, %c0_34] : memref<2x8x32xf32, #tpu.memory_space<vmem>>, vector<2x1x32xf32>
    %61 = vector.shape_cast %60 : vector<2x1x32xf32> to vector<2x32xf32>
    %62 = vector.shape_cast %59 : vector<2x32xf32> to vector<2x1x32xf32>
    tpu.vector_store %arg9[%c0_33, %c1, %c0_34], %62 {strides = array<i32>} : memref<2x8x32xf32, #tpu.memory_space<vmem>>, vector<2x1x32xf32>,
    %cst_35 = arith.constant 0.000000e+00 : f32
    %63 = vector.broadcast %cst_35 : f32 to vector<2x32xf32>
    %64 = arith.subf %63, %59 : vector<2x32xf32>
    %65 = math.exp %64 : vector<2x32xf32>
    %cst_36 = arith.constant 1.000000e+00 : f32
    %66 = vector.broadcast %cst_36 : f32 to vector<2x32xf32>
    %67 = arith.addf %66, %65 : vector<2x32xf32>
    %cst_37 = arith.constant 1.000000e+00 : f32
    %68 = vector.broadcast %cst_37 : f32 to vector<2x32xf32>
    %69 = arith.divf %68, %67 : vector<2x32xf32>
    %cst_38 = arith.constant dense<0.000000e+00> : vector<2x32xf32>
    %70 = tpu.matmul %69, %3, %cst_38 {dimension_numbers = #tpu.dot_dimension_numbers<[1], [0], [0], [1], [0, 0, 1, 1], [], []>} : vector<2x32xf32>, vector<32x32xf32>, vector<2x32xf32> -> vector<2x32xf32>
    %cst_39 = arith.constant 0.000000e+00 : f32
    %71 = vector.broadcast %cst_39 : f32 to vector<2x32xf32>
    %72 = arith.maximumf %70, %71 : vector<2x32xf32>
    %73 = vector.broadcast %4 : vector<1x32xf32> to vector<2x32xf32>
    %74 = arith.mulf %72, %73 : vector<2x32xf32>
    %cst_40 = arith.constant 0.899999976 : f32
    %75 = vector.broadcast %cst_40 : f32 to vector<2x32xf32>
    %76 = arith.mulf %75, %59 : vector<2x32xf32>
    %cst_41 = arith.constant 1.000000e-01 : f32
    %77 = vector.broadcast %cst_41 : f32 to vector<2x32xf32>
    %78 = arith.mulf %77, %74 : vector<2x32xf32>
    %79 = arith.addf %76, %78 : vector<2x32xf32>
    %80 = vector.extract_strided_slice %15 {offsets = [0, 2, 0], sizes = [2, 1, 32], strides = [1, 1, 1]} : vector<2x8x32xf32> to vector<2x1x32xf32>
    %81 = vector.shape_cast %80 : vector<2x1x32xf32> to vector<2x32xf32>
    %82 = arith.addf %79, %81 : vector<2x32xf32>
    %c0_42 = arith.constant 0 : index
    %c2 = arith.constant 2 : index
    %c0_43 = arith.constant 0 : index
    %83 = vector.load %arg9[%c0_42, %c2, %c0_43] : memref<2x8x32xf32, #tpu.memory_space<vmem>>, vector<2x1x32xf32>
    %84 = vector.shape_cast %83 : vector<2x1x32xf32> to vector<2x32xf32>
    %85 = vector.shape_cast %82 : vector<2x32xf32> to vector<2x1x32xf32>
    tpu.vector_store %arg9[%c0_42, %c2, %c0_43], %85 {strides = array<i32>} : memref<2x8x32xf32, #tpu.memory_space<vmem>>, vector<2x1x32xf32>,
    %cst_44 = arith.constant 0.000000e+00 : f32
    %86 = vector.broadcast %cst_44 : f32 to vector<2x32xf32>
    %87 = arith.subf %86, %82 : vector<2x32xf32>
    %88 = math.exp %87 : vector<2x32xf32>
    %cst_45 = arith.constant 1.000000e+00 : f32
    %89 = vector.broadcast %cst_45 : f32 to vector<2x32xf32>
    %90 = arith.addf %89, %88 : vector<2x32xf32>
    %cst_46 = arith.constant 1.000000e+00 : f32
    %91 = vector.broadcast %cst_46 : f32 to vector<2x32xf32>
    %92 = arith.divf %91, %90 : vector<2x32xf32>
    %cst_47 = arith.constant dense<0.000000e+00> : vector<2x32xf32>
    %93 = tpu.matmul %92, %3, %cst_47 {dimension_numbers = #tpu.dot_dimension_numbers<[1], [0], [0], [1], [0, 0, 1, 1], [], []>} : vector<2x32xf32>, vector<32x32xf32>, vector<2x32xf32> -> vector<2x32xf32>
    %cst_48 = arith.constant 0.000000e+00 : f32
    %94 = vector.broadcast %cst_48 : f32 to vector<2x32xf32>
    %95 = arith.maximumf %93, %94 : vector<2x32xf32>
    %96 = vector.broadcast %4 : vector<1x32xf32> to vector<2x32xf32>
    %97 = arith.mulf %95, %96 : vector<2x32xf32>
    %cst_49 = arith.constant 0.899999976 : f32
    %98 = vector.broadcast %cst_49 : f32 to vector<2x32xf32>
    %99 = arith.mulf %98, %82 : vector<2x32xf32>
    %cst_50 = arith.constant 1.000000e-01 : f32
    %100 = vector.broadcast %cst_50 : f32 to vector<2x32xf32>
    %101 = arith.mulf %100, %97 : vector<2x32xf32>
    %102 = arith.addf %99, %101 : vector<2x32xf32>
    %103 = vector.extract_strided_slice %15 {offsets = [0, 3, 0], sizes = [2, 1, 32], strides = [1, 1, 1]} : vector<2x8x32xf32> to vector<2x1x32xf32>
    %104 = vector.shape_cast %103 : vector<2x1x32xf32> to vector<2x32xf32>
    %105 = arith.addf %102, %104 : vector<2x32xf32>
    %c0_51 = arith.constant 0 : index
    %c3 = arith.constant 3 : index
    %c0_52 = arith.constant 0 : index
    %106 = vector.load %arg9[%c0_51, %c3, %c0_52] : memref<2x8x32xf32, #tpu.memory_space<vmem>>, vector<2x1x32xf32>
    %107 = vector.shape_cast %106 : vector<2x1x32xf32> to vector<2x32xf32>
    %108 = vector.shape_cast %105 : vector<2x32xf32> to vector<2x1x32xf32>
    tpu.vector_store %arg9[%c0_51, %c3, %c0_52], %108 {strides = array<i32>} : memref<2x8x32xf32, #tpu.memory_space<vmem>>, vector<2x1x32xf32>,
    %cst_53 = arith.constant 0.000000e+00 : f32
    %109 = vector.broadcast %cst_53 : f32 to vector<2x32xf32>
    %110 = arith.subf %109, %105 : vector<2x32xf32>
    %111 = math.exp %110 : vector<2x32xf32>
    %cst_54 = arith.constant 1.000000e+00 : f32
    %112 = vector.broadcast %cst_54 : f32 to vector<2x32xf32>
    %113 = arith.addf %112, %111 : vector<2x32xf32>
    %cst_55 = arith.constant 1.000000e+00 : f32
    %114 = vector.broadcast %cst_55 : f32 to vector<2x32xf32>
    %115 = arith.divf %114, %113 : vector<2x32xf32>
    %cst_56 = arith.constant dense<0.000000e+00> : vector<2x32xf32>
    %116 = tpu.matmul %115, %3, %cst_56 {dimension_numbers = #tpu.dot_dimension_numbers<[1], [0], [0], [1], [0, 0, 1, 1], [], []>} : vector<2x32xf32>, vector<32x32xf32>, vector<2x32xf32> -> vector<2x32xf32>
    %cst_57 = arith.constant 0.000000e+00 : f32
    %117 = vector.broadcast %cst_57 : f32 to vector<2x32xf32>
    %118 = arith.maximumf %116, %117 : vector<2x32xf32>
    %119 = vector.broadcast %4 : vector<1x32xf32> to vector<2x32xf32>
    %120 = arith.mulf %118, %119 : vector<2x32xf32>
    %cst_58 = arith.constant 0.899999976 : f32
    %121 = vector.broadcast %cst_58 : f32 to vector<2x32xf32>
    %122 = arith.mulf %121, %105 : vector<2x32xf32>
    %cst_59 = arith.constant 1.000000e-01 : f32
    %123 = vector.broadcast %cst_59 : f32 to vector<2x32xf32>
    %124 = arith.mulf %123, %120 : vector<2x32xf32>
    %125 = arith.addf %122, %124 : vector<2x32xf32>
    %126 = vector.extract_strided_slice %15 {offsets = [0, 4, 0], sizes = [2, 1, 32], strides = [1, 1, 1]} : vector<2x8x32xf32> to vector<2x1x32xf32>
    %127 = vector.shape_cast %126 : vector<2x1x32xf32> to vector<2x32xf32>
    %128 = arith.addf %125, %127 : vector<2x32xf32>
    %c0_60 = arith.constant 0 : index
    %c4 = arith.constant 4 : index
    %c0_61 = arith.constant 0 : index
    %129 = vector.load %arg9[%c0_60, %c4, %c0_61] : memref<2x8x32xf32, #tpu.memory_space<vmem>>, vector<2x1x32xf32>
    %130 = vector.shape_cast %129 : vector<2x1x32xf32> to vector<2x32xf32>
    %131 = vector.shape_cast %128 : vector<2x32xf32> to vector<2x1x32xf32>
    tpu.vector_store %arg9[%c0_60, %c4, %c0_61], %131 {strides = array<i32>} : memref<2x8x32xf32, #tpu.memory_space<vmem>>, vector<2x1x32xf32>,
    %cst_62 = arith.constant 0.000000e+00 : f32
    %132 = vector.broadcast %cst_62 : f32 to vector<2x32xf32>
    %133 = arith.subf %132, %128 : vector<2x32xf32>
    %134 = math.exp %133 : vector<2x32xf32>
    %cst_63 = arith.constant 1.000000e+00 : f32
    %135 = vector.broadcast %cst_63 : f32 to vector<2x32xf32>
    %136 = arith.addf %135, %134 : vector<2x32xf32>
    %cst_64 = arith.constant 1.000000e+00 : f32
    %137 = vector.broadcast %cst_64 : f32 to vector<2x32xf32>
    %138 = arith.divf %137, %136 : vector<2x32xf32>
    %cst_65 = arith.constant dense<0.000000e+00> : vector<2x32xf32>
    %139 = tpu.matmul %138, %3, %cst_65 {dimension_numbers = #tpu.dot_dimension_numbers<[1], [0], [0], [1], [0, 0, 1, 1], [], []>} : vector<2x32xf32>, vector<32x32xf32>, vector<2x32xf32> -> vector<2x32xf32>
    %cst_66 = arith.constant 0.000000e+00 : f32
    %140 = vector.broadcast %cst_66 : f32 to vector<2x32xf32>
    %141 = arith.maximumf %139, %140 : vector<2x32xf32>
    %142 = vector.broadcast %4 : vector<1x32xf32> to vector<2x32xf32>
    %143 = arith.mulf %141, %142 : vector<2x32xf32>
    %cst_67 = arith.constant 0.899999976 : f32
    %144 = vector.broadcast %cst_67 : f32 to vector<2x32xf32>
    %145 = arith.mulf %144, %128 : vector<2x32xf32>
    %cst_68 = arith.constant 1.000000e-01 : f32
    %146 = vector.broadcast %cst_68 : f32 to vector<2x32xf32>
    %147 = arith.mulf %146, %143 : vector<2x32xf32>
    %148 = arith.addf %145, %147 : vector<2x32xf32>
    %149 = vector.extract_strided_slice %15 {offsets = [0, 5, 0], sizes = [2, 1, 32], strides = [1, 1, 1]} : vector<2x8x32xf32> to vector<2x1x32xf32>
    %150 = vector.shape_cast %149 : vector<2x1x32xf32> to vector<2x32xf32>
    %151 = arith.addf %148, %150 : vector<2x32xf32>
    %c0_69 = arith.constant 0 : index
    %c5 = arith.constant 5 : index
    %c0_70 = arith.constant 0 : index
    %152 = vector.load %arg9[%c0_69, %c5, %c0_70] : memref<2x8x32xf32, #tpu.memory_space<vmem>>, vector<2x1x32xf32>
    %153 = vector.shape_cast %152 : vector<2x1x32xf32> to vector<2x32xf32>
    %154 = vector.shape_cast %151 : vector<2x32xf32> to vector<2x1x32xf32>
    tpu.vector_store %arg9[%c0_69, %c5, %c0_70], %154 {strides = array<i32>} : memref<2x8x32xf32, #tpu.memory_space<vmem>>, vector<2x1x32xf32>,
    %cst_71 = arith.constant 0.000000e+00 : f32
    %155 = vector.broadcast %cst_71 : f32 to vector<2x32xf32>
    %156 = arith.subf %155, %151 : vector<2x32xf32>
    %157 = math.exp %156 : vector<2x32xf32>
    %cst_72 = arith.constant 1.000000e+00 : f32
    %158 = vector.broadcast %cst_72 : f32 to vector<2x32xf32>
    %159 = arith.addf %158, %157 : vector<2x32xf32>
    %cst_73 = arith.constant 1.000000e+00 : f32
    %160 = vector.broadcast %cst_73 : f32 to vector<2x32xf32>
    %161 = arith.divf %160, %159 : vector<2x32xf32>
    %cst_74 = arith.constant dense<0.000000e+00> : vector<2x32xf32>
    %162 = tpu.matmul %161, %3, %cst_74 {dimension_numbers = #tpu.dot_dimension_numbers<[1], [0], [0], [1], [0, 0, 1, 1], [], []>} : vector<2x32xf32>, vector<32x32xf32>, vector<2x32xf32> -> vector<2x32xf32>
    %cst_75 = arith.constant 0.000000e+00 : f32
    %163 = vector.broadcast %cst_75 : f32 to vector<2x32xf32>
    %164 = arith.maximumf %162, %163 : vector<2x32xf32>
    %165 = vector.broadcast %4 : vector<1x32xf32> to vector<2x32xf32>
    %166 = arith.mulf %164, %165 : vector<2x32xf32>
    %cst_76 = arith.constant 0.899999976 : f32
    %167 = vector.broadcast %cst_76 : f32 to vector<2x32xf32>
    %168 = arith.mulf %167, %151 : vector<2x32xf32>
    %cst_77 = arith.constant 1.000000e-01 : f32
    %169 = vector.broadcast %cst_77 : f32 to vector<2x32xf32>
    %170 = arith.mulf %169, %166 : vector<2x32xf32>
    %171 = arith.addf %168, %170 : vector<2x32xf32>
    %172 = vector.extract_strided_slice %15 {offsets = [0, 6, 0], sizes = [2, 1, 32], strides = [1, 1, 1]} : vector<2x8x32xf32> to vector<2x1x32xf32>
    %173 = vector.shape_cast %172 : vector<2x1x32xf32> to vector<2x32xf32>
    %174 = arith.addf %171, %173 : vector<2x32xf32>
    %c0_78 = arith.constant 0 : index
    %c6 = arith.constant 6 : index
    %c0_79 = arith.constant 0 : index
    %175 = vector.load %arg9[%c0_78, %c6, %c0_79] : memref<2x8x32xf32, #tpu.memory_space<vmem>>, vector<2x1x32xf32>
    %176 = vector.shape_cast %175 : vector<2x1x32xf32> to vector<2x32xf32>
    %177 = vector.shape_cast %174 : vector<2x32xf32> to vector<2x1x32xf32>
    tpu.vector_store %arg9[%c0_78, %c6, %c0_79], %177 {strides = array<i32>} : memref<2x8x32xf32, #tpu.memory_space<vmem>>, vector<2x1x32xf32>,
    %cst_80 = arith.constant 0.000000e+00 : f32
    %178 = vector.broadcast %cst_80 : f32 to vector<2x32xf32>
    %179 = arith.subf %178, %174 : vector<2x32xf32>
    %180 = math.exp %179 : vector<2x32xf32>
    %cst_81 = arith.constant 1.000000e+00 : f32
    %181 = vector.broadcast %cst_81 : f32 to vector<2x32xf32>
    %182 = arith.addf %181, %180 : vector<2x32xf32>
    %cst_82 = arith.constant 1.000000e+00 : f32
    %183 = vector.broadcast %cst_82 : f32 to vector<2x32xf32>
    %184 = arith.divf %183, %182 : vector<2x32xf32>
    %cst_83 = arith.constant dense<0.000000e+00> : vector<2x32xf32>
    %185 = tpu.matmul %184, %3, %cst_83 {dimension_numbers = #tpu.dot_dimension_numbers<[1], [0], [0], [1], [0, 0, 1, 1], [], []>} : vector<2x32xf32>, vector<32x32xf32>, vector<2x32xf32> -> vector<2x32xf32>
    %cst_84 = arith.constant 0.000000e+00 : f32
    %186 = vector.broadcast %cst_84 : f32 to vector<2x32xf32>
    %187 = arith.maximumf %185, %186 : vector<2x32xf32>
    %188 = vector.broadcast %4 : vector<1x32xf32> to vector<2x32xf32>
    %189 = arith.mulf %187, %188 : vector<2x32xf32>
    %cst_85 = arith.constant 0.899999976 : f32
    %190 = vector.broadcast %cst_85 : f32 to vector<2x32xf32>
    %191 = arith.mulf %190, %174 : vector<2x32xf32>
    %cst_86 = arith.constant 1.000000e-01 : f32
    %192 = vector.broadcast %cst_86 : f32 to vector<2x32xf32>
    %193 = arith.mulf %192, %189 : vector<2x32xf32>
    %194 = arith.addf %191, %193 : vector<2x32xf32>
    %195 = vector.extract_strided_slice %15 {offsets = [0, 7, 0], sizes = [2, 1, 32], strides = [1, 1, 1]} : vector<2x8x32xf32> to vector<2x1x32xf32>
    %196 = vector.shape_cast %195 : vector<2x1x32xf32> to vector<2x32xf32>
    %197 = arith.addf %194, %196 : vector<2x32xf32>
    %c0_87 = arith.constant 0 : index
    %c7 = arith.constant 7 : index
    %c0_88 = arith.constant 0 : index
    %198 = vector.load %arg9[%c0_87, %c7, %c0_88] : memref<2x8x32xf32, #tpu.memory_space<vmem>>, vector<2x1x32xf32>
    %199 = vector.shape_cast %198 : vector<2x1x32xf32> to vector<2x32xf32>
    %200 = vector.shape_cast %197 : vector<2x32xf32> to vector<2x1x32xf32>
    tpu.vector_store %arg9[%c0_87, %c7, %c0_88], %200 {strides = array<i32>} : memref<2x8x32xf32, #tpu.memory_space<vmem>>, vector<2x1x32xf32>,
    %c0_89 = arith.constant 0 : index
    %c0_90 = arith.constant 0 : index
    %201 = vector.load %arg10[%c0_89, %c0_90] : memref<2x32xf32, #tpu.memory_space<vmem>>, vector<2x32xf32>
    tpu.vector_store %arg10[%c0_89, %c0_90], %197 {strides = array<i32>} : memref<2x32xf32, #tpu.memory_space<vmem>>, vector<2x32xf32>,
    %c0_91 = arith.constant 0 : index
    %c0_92 = arith.constant 0 : index
    %c0_93 = arith.constant 0 : index
    %202 = vector.load %arg9[%c0_91, %c0_92, %c0_93] : memref<2x8x32xf32, #tpu.memory_space<vmem>>, vector<2x8x32xf32>
    %cst_94 = arith.constant 0.000000e+00 : f32
    %203 = vector.broadcast %cst_94 : f32 to vector<2x8x32xf32>
    %204 = arith.subf %203, %202 : vector<2x8x32xf32>
    %205 = math.exp %204 : vector<2x8x32xf32>
    %cst_95 = arith.constant 1.000000e+00 : f32
    %206 = vector.broadcast %cst_95 : f32 to vector<2x8x32xf32>
    %207 = arith.addf %206, %205 : vector<2x8x32xf32>
    %cst_96 = arith.constant 1.000000e+00 : f32
    %208 = vector.broadcast %cst_96 : f32 to vector<2x8x32xf32>
    %209 = arith.divf %208, %207 : vector<2x8x32xf32>
    %210 = vector.shape_cast %209 : vector<2x8x32xf32> to vector<16x32xf32>
    %c0_97 = arith.constant 0 : index
    %c0_98 = arith.constant 0 : index
    %211 = vector.load %arg6[%c0_97, %c0_98] : memref<32x10xf32, #tpu.memory_space<vmem>>, vector<32x10xf32>
    %cst_99 = arith.constant dense<0.000000e+00> : vector<16x10xf32>
    %212 = tpu.matmul %210, %211, %cst_99 {dimension_numbers = #tpu.dot_dimension_numbers<[1], [0], [0], [1], [0, 0, 1, 1], [], []>} : vector<16x32xf32>, vector<32x10xf32>, vector<16x10xf32> -> vector<16x10xf32>
    %cst_100 = arith.constant dense<0xFF800000> : vector<16xf32>
    %213 = vector.multi_reduction <maximumf>, %212, %cst_100 [1] : vector<16x10xf32> to vector<16xf32>
    %214 = vector.shape_cast %213 : vector<16xf32> to vector<16x1xf32>
    %215 = vector.broadcast %214 : vector<16x1xf32> to vector<16x10xf32>
    %216 = arith.subf %212, %215 : vector<16x10xf32>
    %217 = math.exp %216 : vector<16x10xf32>
    %cst_101 = arith.constant dense<0.000000e+00> : vector<16xf32>
    %218 = vector.multi_reduction <add>, %217, %cst_101 [1] : vector<16x10xf32> to vector<16xf32>
    %219 = vector.shape_cast %218 : vector<16xf32> to vector<16x1xf32>
    %220 = tpu.reciprocal %219 : vector<16x1xf32> -> vector<16x1xf32>
    %221 = vector.broadcast %220 : vector<16x1xf32> to vector<16x10xf32>
    %222 = arith.mulf %217, %221 : vector<16x10xf32>
    %223 = vector.shape_cast %222 : vector<16x10xf32> to vector<2x8x10xf32>
    %c0_102 = arith.constant 0 : index
    %c0_103 = arith.constant 0 : index
    %c0_104 = arith.constant 0 : index
    %224 = vector.load %arg8[%c0_102, %c0_103, %c0_104] : memref<2x8x10xf32, #tpu.memory_space<vmem>>, vector<2x8x10xf32>
    tpu.vector_store %arg8[%c0_102, %c0_103, %c0_104], %223 {strides = array<i32>} : memref<2x8x10xf32, #tpu.memory_space<vmem>>, vector<2x8x10xf32>,
    return
  }
  func.func @transform_0(%arg0: i32) -> (i32, i32, i32) {
    %c0_i32 = arith.constant 0 : i32
    %c0_i32_0 = arith.constant 0 : i32
    %c0_i32_1 = arith.constant 0 : i32
    return %c0_i32, %arg0, %c0_i32_0 : i32, i32, i32
  }
  func.func @transform_1(%arg0: i32) -> (i32, i32, i32) {
    %c0_i32 = arith.constant 0 : i32
    %c0_i32_0 = arith.constant 0 : i32
    %c0_i32_1 = arith.constant 0 : i32
    return %c0_i32, %arg0, %c0_i32_0 : i32, i32, i32
  }
  func.func @transform_2(%arg0: i32) -> (i32, i32) {
    %c0_i32 = arith.constant 0 : i32
    %c0_i32_0 = arith.constant 0 : i32
    %c0_i32_1 = arith.constant 0 : i32
    return %c0_i32, %c0_i32_0 : i32, i32
  }
  func.func @transform_3(%arg0: i32) -> (i32, i32) {
    %c0_i32 = arith.constant 0 : i32
    %c0_i32_0 = arith.constant 0 : i32
    %c0_i32_1 = arith.constant 0 : i32
    return %c0_i32, %c0_i32_0 : i32, i32
  }
  func.func @transform_4(%arg0: i32) -> (i32, i32) {
    %c0_i32 = arith.constant 0 : i32
    %c0_i32_0 = arith.constant 0 : i32
    %c0_i32_1 = arith.constant 0 : i32
    return %c0_i32, %c0_i32_0 : i32, i32
  }
  func.func @transform_5(%arg0: i32) -> (i32, i32) {
    %c0_i32 = arith.constant 0 : i32
    %c0_i32_0 = arith.constant 0 : i32
    %c0_i32_1 = arith.constant 0 : i32
    return %c0_i32, %c0_i32_0 : i32, i32
  }
  func.func @transform_6(%arg0: i32) -> (i32, i32) {
    %c0_i32 = arith.constant 0 : i32
    %c0_i32_0 = arith.constant 0 : i32
    %c0_i32_1 = arith.constant 0 : i32
    return %c0_i32, %c0_i32_0 : i32, i32
  }
  func.func @transform_7(%arg0: i32) -> (i32, i32, i32) {
    %c0_i32 = arith.constant 0 : i32
    %c0_i32_0 = arith.constant 0 : i32
    %c0_i32_1 = arith.constant 0 : i32
    return %c0_i32, %arg0, %c0_i32_0 : i32, i32, i32
  }
  func.func @transform_8(%arg0: i32) -> (i32, i32, i32) {
    %c0_i32 = arith.constant 0 : i32
    %c0_i32_0 = arith.constant 0 : i32
    %c0_i32_1 = arith.constant 0 : i32
    return %c0_i32, %arg0, %c0_i32_0 : i32, i32, i32
  }
}

</mosaic_0001>

<bundles_post_ra>
// kernel: rate_rnn_forward.1
= control target key start
LH: loop header
LB: loop body
LE: loop exit
PB: predicated region body
PF: predicated region fallthrough
CT: control target
= control target key end

     0   :  { %14 = vsyncpa [#allocation4], 0  ;;  %vm46_vm0 = vcmask 130048   ;;  %v1565_v4 = vmov 0.0|0.0   ;;  %vm35_vm1 = vcmask 254976   ;;  %vm1566_vm2 = vmmov 0   ;;  %s1846_s0 = inlined_call_operand.vmem [shape: f32[2,8,16], index: 0, kind: input, shape index: {}]   ;;  %s1847_s1 = inlined_call_operand.vmem [shape: f32[2,8,32], index: 1, kind: input, shape index: {}]   ;;  %s1848_s2 = inlined_call_operand.vmem [shape: f32[2,32], index: 2, kind: input, shape index: {}]   ;;  %s1849_s3 = inlined_call_operand.vmem [shape: f32[16,32], index: 3, kind: input, shape index: {}]   ;;  %s1850_s4 = inlined_call_operand.vmem [shape: f32[32,32], index: 4, kind: input, shape index: {}]   ;;  %s1851_s5 = inlined_call_operand.vmem [shape: f32[32,10], index: 5, kind: input, shape index: {}]   ;;  %s1852_s6 = inlined_call_operand.vmem [shape: f32[1,32], index: 6, kind: input, shape index: {}]   ;;  %s1853_s7 = inlined_call_operand.hbm [shape: f32[2,8,10], index: 7, kind: output, shape index: {0}]   ;;  %s1854_s8 = inlined_call_operand.hbm [shape: f32[2,8,32], index: 8, kind: output, shape index: {1}]  }
   0x1   :  { %v44_v0 = vld [vmem:[%s1849_s3] sm:$0xff]  ;;  %v45_v1 = vld [vmem:[%s1849_s3 + $0x8] sm:$0xff]  ;;  %1405 = vmatprep.subr.bf16.mxu1 %v1565_v4  ;;  %v39_v8 = vld [vmem:[%s1850_s4 + $0x10] sm:$0xff]  ;;  %v1567_v10 = vmov 0.0  }
   0x2   :  { %v37_v2 = vld [vmem:[%s1850_s4] sm:$0xff]  ;;  %v1401_v3 = vpack.c.bf16 %v45_v1, %v44_v0  ;;  %v38_v5 = vld [vmem:[%s1850_s4 + $0x8] sm:$0xff]  ;;  %v40_v9 = vld [vmem:[%s1850_s4 + $0x18] sm:$0xff]  ;;  %1310 = vmatprep.mubr.msk.f32.mxu1 %vm1566_vm2, %v1567_v10 }
   0x3   :  { %v42_v6 = vld [vmem:[%s1846_s0] sm:$0xff]  ;;  %v1634_v7 = vpack.c.bf16 %v38_v5, %v37_v2 }
   0x4   :  { %1299 = vmatprep.mubr.msk.f32.mxu0 %vm46_vm0, %v42_v6  ;;  %v34_v11 = vld [vmem:[%s1848_s2] sm:$0x3]  ;;  %1402 = vmatprep.subr.bf16.mxu0 %v1401_v3 }
   0x5   :  { %36 = vst.msk [vmem:[#allocation2] sm:$0x3] %vm35_vm1, %v34_v11 }
   0x6   :  { %15 = vsyncpa [#allocation6], 0  ;;  %1404 = vmatpush3.bf16.msra.mxu0 %v1401_v3  ;;  %1407 = vmatpush3.bf16.msra.mxu1 %v1634_v7  ;;  %v43_v12 = vld [vmem:[%s1846_s0 + $0x8] sm:$0xff]  ;;  %v1653_v13 = vpack.c.bf16 %v40_v9, %v39_v8  ;;  %vm143_vm3 = vcmask 261120   ;;  %v132_v26 = vld [vmem:[%s1847_s1] sm:$0xff]  ;;  %vm231_vm4 = vcmask 1041409   ;;  %v239_v54 = vlaneseq }
   0x7   :  { %1408 = vmatprep.subr.bf16.mxu1 %v1565_v4  ;;  %1411 = vmatprep.subr.bf16.mxu0 %v1565_v4  ;;  %v133_v23 = vld [vmem:[%s1847_s1 + $0x8] sm:$0xff]  ;;  %v1568_v52 = vmov 1966171168   ;;  %v1702_v55 = vld [vmem:[%s1852_s6] ss:$0 sm:$0xff]  ;;  %vm260_vm5 = vcmask 253952  }
   0x8   :  { %v237_v53 = vunpack.c.l.s4 %v1568_v52  ;;  %v240_v62 = vshrl.u32 %v239_v54, 7  ;;  %vm1175_vm6 = vcmask 80896  }
   0x9   :  { %1300 = vmatmul.mubr.msk.f32.vlgmr.msra.gmra.mrb[0].mxu0 %vm46_vm0, %v43_v12 }
   0xa   :  { %1410 = vmatpush3.bf16.msra.mxu1 %v1653_v13  ;;  %1413 = vmatpush3.bf16.msra.mxu0 %v1634_v7  ;;  %v238_v61 = vunpack.c.0.s8 %v237_v53 }
   0xb   :  { %1414 = vmatprep.subr.bf16.mxu0 %v1565_v4  ;;  %1321 = vmatprep.mubr.msk.f32.mxu0 %vm1566_vm2, %v1567_v10 }
   0xc   :  { %v136_v14 = vld [vmem:[#allocation2] sm:$0x3]  ;;  %1417 = vmatprep.subr.bf16.mxu1 %v1565_v4  ;;  %v1705_v1 = vsub.s32 %v238_v61, %v240_v62 }
   0xd   :  { %v137_v15 = vsub.f32 0.0, %v136_v14  ;;  %v225_v60 = vmul.f32 0.9, %v136_v14 }
   0xe   :  { %1416 = vmatpush3.bf16.msra.mxu0 %v1653_v13 }
   0xf   :  { %v138_v16 = vmul.f32 1.442695, %v137_v15  ;;  %1423 = vmatprep.subr.bf16.mxu0 %v1565_v4 }
  0x11   :  { %1469 = vpow2.f32 %v138_v16 }
  0x1b   :  { %v1470_v17 = vpop.eup %1469 }
  0x1c   :  { %v140_v18 = vadd.f32 1.0, %v1470_v17 }
  0x1e   :  { %1471 = vrcp.f32 %v140_v18 }
  0x28   :  { %v1472_v19 = vpop.eup %1471 }
  0x29   :  { %1311 = vmatmul.mubr.msk.f32.vlgmr.msra.gmra.mrb[0].mxu1 %vm143_vm3, %v1472_v19 }
  0x2a   :  { %1419 = vmatpush3.bf16.msra.mxu1 %v1634_v7  ;;  %1332 = vmatprep.mubr.msk.f32.mxu1 %vm1566_vm2, %v1567_v10 }
  0x2b   :  { %1420 = vmatprep.subr.bf16.mxu1 %v1565_v4 }
  0x2e   :  { %1422 = vmatpush3.bf16.msra.mxu1 %v1653_v13 }
  0x2f   :  { %1429 = vmatprep.subr.bf16.mxu1 %v1565_v4 }
  0xdc   :  { %v1301_v20 = vpop.f32.mrb[0].mxu0 }
  0xdd   :  { %v129_v21 = vmax.f32 %v1301_v20, 0.0  ;;  %v119_v22 = vpop.f32.mrb[1].mxu0 }
  0xde   :  { %v128_v24 = vmax.f32 %v119_v22, 0.0 }
  0xdf   :  { %v131_v25 = vmul.f32 0.1, %v129_v21 }
  0xe0   :  { %v130_v27 = vmul.f32 0.1, %v128_v24 }
  0xe1   :  { %v135_v28 = vadd.f32 %v133_v23, %v131_v25 }
  0xe2   :  { %v134_v29 = vadd.f32 %v132_v26, %v130_v27 }
  0xe3   :  { %v230_v30 = vrot.slane %v135_v28, 7  ;;  %v463_v31 = vrot.slane %v135_v28, 1  ;;  %v579_v32 = vrot.slane %v135_v28, 2  ;;  %v695_v33 = vrot.slane %v135_v28, 3 }
  0xe4   :  { %v347_v34 = vrot.slane %v134_v29, 1  ;;  %v462_v35 = vrot.slane %v134_v29, 2  ;;  %v578_v36 = vrot.slane %v134_v29, 3  ;;  %v694_v37 = vrot.slane %v134_v29, 4 }
  0xe5   :  { %v232_v38 = vsel %vm231_vm4, %v230_v30, %v134_v29  ;;  %v810_v39 = vrot.slane %v134_v29, 5  ;;  %v811_v40 = vrot.slane %v135_v28, 4  ;;  %v926_v41 = vrot.slane %v134_v29, 6 }
  0xe6   :  { %v348_v42 = vsel %vm231_vm4, %v135_v28, %v347_v34  ;;  %v1682_v43 = vsel %vm231_vm4, %v463_v31, %v462_v35  ;;  %v1685_v44 = vsel %vm231_vm4, %v579_v32, %v578_v36  ;;  %v1688_v45 = vsel %vm231_vm4, %v695_v33, %v694_v37 }
  0xe7   :  { %v1691_v46 = vsel %vm231_vm4, %v811_v40, %v810_v39  ;;  %v927_v47 = vrot.slane %v135_v28, 5  ;;  %v1042_v48 = vrot.slane %v134_v29, 7  ;;  %v1043_v49 = vrot.slane %v135_v28, 6 }
  0xe9   :  { %v1694_v50 = vsel %vm231_vm4, %v927_v47, %v926_v41  ;;  %v1697_v51 = vsel %vm231_vm4, %v1043_v49, %v1042_v48 }
  0xfc   :  { %v213_v56 = vpop.f32.mrb[0].mxu1 }
  0xfd   :  { %v217_v57 = vmax.f32 %v213_v56, 0.0  ;;  %v1312_v58 = vpop.f32.mrb[1].mxu1 }
  0xff   :  { %v224_v59 = vmul.f32 %v1702_v55, %v217_v57 }
 0x101   :  { %v226_v63 = vmul.f32 0.1, %v224_v59 }
 0x103   :  { %v227_v0 = vadd.f32 %v226_v63, %v225_v60 }
 0x105   :  { %v234_v2 = vadd.f32 %v232_v38, %v227_v0 }
 0x107   :  { %v242_v3 = vrot.slane %v234_v2, %v1705_v1  ;;  %v263_v5 = vsub.f32 0.0, %v234_v2  ;;  %v344_v20 = vmul.f32 0.9, %v234_v2 }
 0x109   :  { %v243_v6 = vcombine.high %v242_v3, %v242_v3  ;;  %v250_v8 = vrot.slane %v242_v3, %v1705_v1  ;;  %v264_v9 = vmul.f32 1.442695, %v263_v5 }
 0x10b   :  { %v257_v11 = vrot.slane %v243_v6, %v1705_v1  ;;  %261 = vst.msk [vmem:[#allocation5] sm:$0x1] %vm260_vm5, %v250_v8  ;;  %1473 = vpow2.f32 %v264_v9 }
 0x10d   :  { %262 = vst.msk [vmem:[#allocation5 + $0x8] sm:$0x1] %vm260_vm5, %v257_v11 }
 0x115   :  { %v1474_v12 = vpop.eup %1473 }
 0x116   :  { %v266_v14 = vadd.f32 1.0, %v1474_v12 }
 0x118   :  { %1475 = vrcp.f32 %v266_v14 }
 0x122   :  { %v1476_v15 = vpop.eup %1475 }
 0x123   :  { %1322 = vmatmul.mubr.msk.f32.vlgmr.msra.gmra.mrb[2].mxu0 %vm143_vm3, %v1476_v15 }
 0x124   :  { %1425 = vmatpush3.bf16.msra.mxu0 %v1634_v7  ;;  %1343 = vmatprep.mubr.msk.f32.mxu0 %vm1566_vm2, %v1567_v10 }
 0x125   :  { %1426 = vmatprep.subr.bf16.mxu0 %v1565_v4 }
 0x128   :  { %1428 = vmatpush3.bf16.msra.mxu0 %v1653_v13 }
 0x129   :  { %1435 = vmatprep.subr.bf16.mxu0 %v1565_v4 }
 0x1f6   :  { %v338_v16 = vpop.f32.mrb[2].mxu0 }
 0x1f7   :  { %v342_v17 = vmax.f32 %v338_v16, 0.0  ;;  %v1323_v18 = vpop.f32.mrb[3].mxu0 }
 0x1f9   :  { %v343_v19 = vmul.f32 %v1702_v55, %v342_v17 }
 0x1fb   :  { %v345_v21 = vmul.f32 0.1, %v343_v19 }
 0x1fd   :  { %v346_v22 = vadd.f32 %v345_v21, %v344_v20 }
 0x1ff   :  { %v350_v23 = vadd.f32 %v348_v42, %v346_v22 }
 0x201   :  { %v358_v24 = vrot.slane %v350_v23, %v1705_v1  ;;  %v378_v25 = vsub.f32 0.0, %v350_v23  ;;  %v459_v37 = vmul.f32 0.9, %v350_v23 }
 0x203   :  { %v359_v26 = vcombine.high %v358_v24, %v358_v24  ;;  %v366_v27 = vrot.slane %v358_v24, %v1705_v1  ;;  %v379_v28 = vmul.f32 1.442695, %v378_v25 }
 0x205   :  { %v373_v29 = vrot.slane %v359_v26, %v1705_v1  ;;  %376 = vst.msk [vmem:[#allocation5 + $0x1] sm:$0x1] %vm260_vm5, %v366_v27  ;;  %1477 = vpow2.f32 %v379_v28 }
 0x207   :  { %377 = vst.msk [vmem:[#allocation5 + $0x9] sm:$0x1] %vm260_vm5, %v373_v29 }
 0x20f   :  { %v1478_v30 = vpop.eup %1477 }
 0x210   :  { %v381_v31 = vadd.f32 1.0, %v1478_v30 }
 0x212   :  { %1479 = vrcp.f32 %v381_v31 }
 0x21c   :  { %v1480_v32 = vpop.eup %1479 }
 0x21d   :  { %1333 = vmatmul.mubr.msk.f32.vlgmr.msra.gmra.mrb[2].mxu1 %vm143_vm3, %v1480_v32 }
 0x21e   :  { %1431 = vmatpush3.bf16.msra.mxu1 %v1634_v7  ;;  %1354 = vmatprep.mubr.msk.f32.mxu1 %vm1566_vm2, %v1567_v10 }
 0x21f   :  { %1432 = vmatprep.subr.bf16.mxu1 %v1565_v4 }
 0x222   :  { %1434 = vmatpush3.bf16.msra.mxu1 %v1653_v13 }
 0x223   :  { %1441 = vmatprep.subr.bf16.mxu1 %v1565_v4 }
 0x2f0   :  { %v453_v33 = vpop.f32.mrb[2].mxu1 }
 0x2f1   :  { %v457_v34 = vmax.f32 %v453_v33, 0.0  ;;  %v1334_v35 = vpop.f32.mrb[3].mxu1 }
 0x2f3   :  { %v458_v36 = vmul.f32 %v1702_v55, %v457_v34 }
 0x2f5   :  { %v460_v38 = vmul.f32 0.1, %v458_v36 }
 0x2f7   :  { %v461_v39 = vadd.f32 %v460_v38, %v459_v37 }
 0x2f9   :  { %v466_v40 = vadd.f32 %v1682_v43, %v461_v39 }
 0x2fb   :  { %v474_v41 = vrot.slane %v466_v40, %v1705_v1  ;;  %v494_v42 = vsub.f32 0.0, %v466_v40  ;;  %v575_v60 = vmul.f32 0.9, %v466_v40 }
 0x2fd   :  { %v475_v47 = vcombine.high %v474_v41, %v474_v41  ;;  %v482_v48 = vrot.slane %v474_v41, %v1705_v1  ;;  %v495_v49 = vmul.f32 1.442695, %v494_v42 }
 0x2ff   :  { %v489_v52 = vrot.slane %v475_v47, %v1705_v1  ;;  %492 = vst.msk [vmem:[#allocation5 + $0x2] sm:$0x1] %vm260_vm5, %v482_v48  ;;  %1481 = vpow2.f32 %v495_v49 }
 0x301   :  { %493 = vst.msk [vmem:[#allocation5 + $0xa] sm:$0x1] %vm260_vm5, %v489_v52 }
 0x309   :  { %v1482_v53 = vpop.eup %1481 }
 0x30a   :  { %v497_v54 = vadd.f32 1.0, %v1482_v53 }
 0x30c   :  { %1483 = vrcp.f32 %v497_v54 }
 0x316   :  { %v1484_v56 = vpop.eup %1483 }
 0x317   :  { %1344 = vmatmul.mubr.msk.f32.vlgmr.msra.gmra.mrb[4].mxu0 %vm143_vm3, %v1484_v56 }
 0x318   :  { %1437 = vmatpush3.bf16.msra.mxu0 %v1634_v7  ;;  %1365 = vmatprep.mubr.msk.f32.mxu0 %vm1566_vm2, %v1567_v10 }
 0x319   :  { %1438 = vmatprep.subr.bf16.mxu0 %v1565_v4 }
 0x31c   :  { %1440 = vmatpush3.bf16.msra.mxu0 %v1653_v13 }
 0x31d   :  { %1447 = vmatprep.subr.bf16.mxu0 %v1565_v4 }
 0x3ea   :  { %v569_v43 = vpop.f32.mrb[4].mxu0 }
 0x3eb   :  { %v573_v57 = vmax.f32 %v569_v43, 0.0  ;;  %v1345_v58 = vpop.f32.mrb[5].mxu0 }
 0x3ed   :  { %v574_v59 = vmul.f32 %v1702_v55, %v573_v57 }
 0x3ef   :  { %v576_v61 = vmul.f32 0.1, %v574_v59 }
 0x3f1   :  { %v577_v62 = vadd.f32 %v576_v61, %v575_v60 }
 0x3f3   :  { %v582_v63 = vadd.f32 %v1685_v44, %v577_v62 }
 0x3f5   :  { %v590_v0 = vrot.slane %v582_v63, %v1705_v1  ;;  %v610_v2 = vsub.f32 0.0, %v582_v63  ;;  %v691_v17 = vmul.f32 0.9, %v582_v63 }
 0x3f7   :  { %v591_v3 = vcombine.high %v590_v0, %v590_v0  ;;  %v598_v5 = vrot.slane %v590_v0, %v1705_v1  ;;  %v611_v6 = vmul.f32 1.442695, %v610_v2  ;;  %v1091_v0 = vld [vmem:[%s1851_s5 + $0x8] sm:$0xff]  ;;  %v1092_v2 = vld [vmem:[%s1851_s5 + $0x10] sm:$0xff] }
 0x3f9   :  { %v605_v8 = vrot.slane %v591_v3, %v1705_v1  ;;  %608 = vst.msk [vmem:[#allocation5 + $0x3] sm:$0x1] %vm260_vm5, %v598_v5  ;;  %1485 = vpow2.f32 %v611_v6  ;;  %v1093_v5 = vld [vmem:[%s1851_s5 + $0x18] sm:$0xff] }
 0x3fa   :  { %v1457_v6 = vpack.c.bf16 %v1093_v5, %v1092_v2 }
 0x3fb   :  { %609 = vst.msk [vmem:[#allocation5 + $0xb] sm:$0x1] %vm260_vm5, %v605_v8 }
 0x403   :  { %v1486_v9 = vpop.eup %1485 }
 0x404   :  { %v613_v11 = vadd.f32 1.0, %v1486_v9 }
 0x406   :  { %1487 = vrcp.f32 %v613_v11 }
 0x410   :  { %v1488_v12 = vpop.eup %1487 }
 0x411   :  { %1355 = vmatmul.mubr.msk.f32.vlgmr.msra.gmra.mrb[4].mxu1 %vm143_vm3, %v1488_v12 }
 0x412   :  { %1443 = vmatpush3.bf16.msra.mxu1 %v1634_v7  ;;  %1376 = vmatprep.mubr.msk.f32.mxu1 %vm1566_vm2, %v1567_v10 }
 0x413   :  { %1444 = vmatprep.subr.bf16.mxu1 %v1565_v4 }
 0x416   :  { %1446 = vmatpush3.bf16.msra.mxu1 %v1653_v13 }
 0x4e4   :  { %v685_v44 = vpop.f32.mrb[4].mxu1 }
 0x4e5   :  { %v689_v14 = vmax.f32 %v685_v44, 0.0  ;;  %v1356_v15 = vpop.f32.mrb[5].mxu1 }
 0x4e7   :  { %v690_v16 = vmul.f32 %v1702_v55, %v689_v14 }
 0x4e9   :  { %v692_v18 = vmul.f32 0.1, %v690_v16 }
 0x4eb   :  { %v693_v19 = vadd.f32 %v692_v18, %v691_v17 }
 0x4ed   :  { %v698_v20 = vadd.f32 %v1688_v45, %v693_v19 }
 0x4ef   :  { %v706_v21 = vrot.slane %v698_v20, %v1705_v1  ;;  %v726_v22 = vsub.f32 0.0, %v698_v20  ;;  %v807_v33 = vmul.f32 0.9, %v698_v20 }
 0x4f1   :  { %v707_v23 = vcombine.high %v706_v21, %v706_v21  ;;  %v714_v24 = vrot.slane %v706_v21, %v1705_v1  ;;  %v727_v25 = vmul.f32 1.442695, %v726_v22 }
 0x4f3   :  { %v721_v26 = vrot.slane %v707_v23, %v1705_v1  ;;  %724 = vst.msk [vmem:[#allocation5 + $0x4] sm:$0x1] %vm260_vm5, %v714_v24  ;;  %1489 = vpow2.f32 %v727_v25 }
 0x4f5   :  { %725 = vst.msk [vmem:[#allocation5 + $0xc] sm:$0x1] %vm260_vm5, %v721_v26 }
 0x4fd   :  { %v1490_v27 = vpop.eup %1489 }
 0x4fe   :  { %v729_v28 = vadd.f32 1.0, %v1490_v27 }
 0x500   :  { %1491 = vrcp.f32 %v729_v28 }
 0x50a   :  { %v1492_v29 = vpop.eup %1491 }
 0x50b   :  { %1366 = vmatmul.mubr.msk.f32.vlgmr.msra.gmra.mrb[6].mxu0 %vm143_vm3, %v1492_v29 }
 0x50c   :  { %1449 = vmatpush3.bf16.msra.mxu0 %v1634_v7  ;;  %1387 = vmatprep.mubr.msk.f32.mxu0 %vm1566_vm2, %v1567_v10 }
 0x50d   :  { %1450 = vmatprep.subr.bf16.mxu0 %v1565_v4 }
 0x510   :  { %1452 = vmatpush3.bf16.msra.mxu0 %v1653_v13 }
 0x5de   :  { %v801_v45 = vpop.f32.mrb[6].mxu0 }
 0x5df   :  { %v805_v30 = vmax.f32 %v801_v45, 0.0  ;;  %v1367_v31 = vpop.f32.mrb[7].mxu0 }
 0x5e1   :  { %v806_v32 = vmul.f32 %v1702_v55, %v805_v30 }
 0x5e3   :  { %v808_v34 = vmul.f32 0.1, %v806_v32 }
 0x5e5   :  { %v809_v35 = vadd.f32 %v808_v34, %v807_v33 }
 0x5e7   :  { %v814_v36 = vadd.f32 %v1691_v46, %v809_v35 }
 0x5e9   :  { %v822_v37 = vrot.slane %v814_v36, %v1705_v1  ;;  %v842_v7 = vsub.f32 0.0, %v814_v36  ;;  %v923_v49 = vmul.f32 0.9, %v814_v36 }
 0x5eb   :  { %v823_v38 = vcombine.high %v822_v37, %v822_v37  ;;  %v830_v10 = vrot.slane %v822_v37, %v1705_v1  ;;  %v843_v39 = vmul.f32 1.442695, %v842_v7 }
 0x5ed   :  { %v837_v4 = vrot.slane %v823_v38, %v1705_v1  ;;  %840 = vst.msk [vmem:[#allocation5 + $0x5] sm:$0x1] %vm260_vm5, %v830_v10  ;;  %1493 = vpow2.f32 %v843_v39 }
 0x5ef   :  { %841 = vst.msk [vmem:[#allocation5 + $0xd] sm:$0x1] %vm260_vm5, %v837_v4 }
 0x5f7   :  { %v1494_v13 = vpop.eup %1493 }
 0x5f8   :  { %v845_v40 = vadd.f32 1.0, %v1494_v13 }
 0x5fa   :  { %1495 = vrcp.f32 %v845_v40 }
 0x604   :  { %v1496_v41 = vpop.eup %1495 }
 0x605   :  { %1377 = vmatmul.mubr.msk.f32.vlgmr.msra.gmra.mrb[6].mxu1 %vm143_vm3, %v1496_v41 }
 0x6d8   :  { %v917_v46 = vpop.f32.mrb[6].mxu1 }
 0x6d9   :  { %v921_v42 = vmax.f32 %v917_v46, 0.0  ;;  %v1378_v47 = vpop.f32.mrb[7].mxu1 }
 0x6db   :  { %v922_v48 = vmul.f32 %v1702_v55, %v921_v42 }
 0x6dd   :  { %v924_v52 = vmul.f32 0.1, %v922_v48 }
 0x6df   :  { %v925_v53 = vadd.f32 %v924_v52, %v923_v49 }
 0x6e1   :  { %v930_v54 = vadd.f32 %v1694_v50, %v925_v53  ;;  %v1090_v50 = vld [vmem:[%s1851_s5] sm:$0xff]  ;;  %s1569_s5 = smov [#allocation5]  }
 0x6e2   :  { %v1453_v3 = vpack.c.bf16 %v1091_v0, %v1090_v50  ;;  %s1217_s9 = sshll.u32 %s1569_s5, 4  ;;  %s1218_s9 = int_to_ptr.vmem [resolvable:$true] %s1217_s9 }
 0x6e3   :  { %v938_v56 = vrot.slane %v930_v54, %v1705_v1  ;;  %v958_v43 = vsub.f32 0.0, %v930_v54  ;;  %v1039_v44 = vmul.f32 0.9, %v930_v54  ;;  %s1517_s10 = scalar_lea.vmem %s1218_s9, 256  ;;  %p1522_p1 = scmp.lt.s32.totalorder %s1218_s9, %s1218_s9 }
 0x6e4   :  { %1454 = vmatprep.subr.bf16.mxu1 %v1453_v3  ;;  %p1518_p0 = scmp.ne.s32.totalorder %s1218_s9, %s1517_s10  ;;  %p1523_p2 = scmp.lt.s32.totalorder %s1517_s10, %s1517_s10 }
 0x6e5   :  { %v939_v57 = vcombine.high %v938_v56, %v938_v56  ;;  %v946_v58 = vrot.slane %v938_v56, %v1705_v1  ;;  %v959_v59 = vmul.f32 1.442695, %v958_v43  ;;  %1456 = vmatpush3.bf16.msra.mxu1 %v1453_v3 }
 0x6e6   :  { %1458 = vmatprep.subr.bf16.mxu1 %v1457_v6  ;;  %p1524_p3 = por %p1523_p2, %p1522_p1 }
 0x6e7   :  { %v953_v60 = vrot.slane %v939_v57, %v1705_v1  ;;  %956 = vst.msk [vmem:[#allocation5 + $0x6] sm:$0x1] %vm260_vm5, %v946_v58  ;;  %1497 = vpow2.f32 %v959_v59 }
 0x6e8   :  { %p1525_p4 = pnand %p1524_p3, %p1518_p0 }
 0x6e9   :  { %957 = vst.msk [vmem:[#allocation5 + $0xe] sm:$0x1] %vm260_vm5, %v953_v60  ;;  %1460 = vmatpush3.bf16.msra.mxu1 %v1457_v6 }
 0x6f1   :  { %v1498_v61 = vpop.eup %1497 }
 0x6f2   :  { %v961_v62 = vadd.f32 1.0, %v1498_v61 }
 0x6f4   :  { %1499 = vrcp.f32 %v961_v62 }
 0x6fe   :  { %v1500_v63 = vpop.eup %1499 }
 0x6ff   :  { %1388 = vmatmul.mubr.msk.f32.vlgmr.msra.gmra.mrb[8].mxu0 %vm143_vm3, %v1500_v63 }
 0x7d2   :  { %v1033_v8 = vpop.f32.mrb[8].mxu0 }
 0x7d3   :  { %v1037_v9 = vmax.f32 %v1033_v8, 0.0  ;;  %v1389_v11 = vpop.f32.mrb[9].mxu0 }
 0x7d5   :  { %v1038_v12 = vmul.f32 %v1702_v55, %v1037_v9 }
 0x7d7   :  { %v1040_v14 = vmul.f32 0.1, %v1038_v12 }
 0x7d9   :  { %v1041_v15 = vadd.f32 %v1040_v14, %v1039_v44 }
 0x7db   :  { %v1046_v16 = vadd.f32 %v1697_v51, %v1041_v15 }
 0x7dd   :  { %v1054_v17 = vrot.slane %v1046_v16, %v1705_v1  ;;  %1075 = vst.msk [vmem:[#allocation2] sm:$0x3] %vm35_vm1, %v1046_v16 }
 0x7df   :  { %v1055_v18 = vcombine.high %v1054_v17, %v1054_v17  ;;  %v1062_v19 = vrot.slane %v1054_v17, %v1705_v1 }
 0x7e1   :  { %v1069_v20 = vrot.slane %v1055_v18, %v1705_v1  ;;  %1072 = vst.msk [vmem:[#allocation5 + $0x7] sm:$0x1] %vm260_vm5, %v1062_v19 }
 0x7e3   :  { %1073 = vst.msk [vmem:[#allocation5 + $0xf] sm:$0x1] %vm260_vm5, %v1069_v20 }
 0x7e8   :  { %v1076_v21 = vld [vmem:[#allocation5] sm:$0xff] }
 0x7e9   :  { %v1078_v55 = vsub.f32 0.0, %v1076_v21 }
 0x7ea   :  { %v1077_v22 = vld [vmem:[#allocation5 + $0x8] sm:$0xff] }
 0x7eb   :  { %v1079_v23 = vsub.f32 0.0, %v1077_v22  ;;  %v1080_v24 = vmul.f32 1.442695, %v1078_v55 }
 0x7ed   :  { %1501 = vpow2.f32 %v1080_v24  ;;  %v1082_v51 = vmul.f32 1.442695, %v1079_v23 }
 0x7ef   :  { %1503 = vpow2.f32 %v1082_v51 }
 0x7f7   :  { %v1502_v25 = vpop.eup %1501 }
 0x7f8   :  { %v1084_v26 = vadd.f32 1.0, %v1502_v25 }
 0x7f9   :  { %v1504_v27 = vpop.eup %1503 }
 0x7fa   :  { %v1085_v28 = vadd.f32 1.0, %v1504_v27  ;;  %1505 = vrcp.f32 %v1084_v26 }
 0x7fc   :  { %1507 = vrcp.f32 %v1085_v28 }
 0x804   :  { %v1506_v29 = vpop.eup %1505 }
 0x805   :  { %1398 = vmatprep.mubr.msk.f32.mxu1 %vm143_vm3, %v1506_v29 }
 0x806   :  { %v1508_v1 = vpop.eup %1507 }
 0x807   :  { %1399 = vmatmul.mubr.msk.f32.vlgmr.msra.gmra.mrb[8].mxu1 %vm143_vm3, %v1508_v1 }
 0x8da   :  { %v1400_v45 = vpop.f32.mrb[8].mxu1 }
 0x8db   :  { %v1166_v30 = vpop.f32.mrb[9].mxu1  ;;  %v1179_v32 = vsel %vm1175_vm6, %v1400_v45, -inf }
 0x8dc   :  { %v1176_v31 = vsel %vm1175_vm6, %v1166_v30, -inf }
 0x8dd   :  { %1177 = vmax.xlane.f32.xlu0 %v1176_v31 }
 0x8e1   :  { %1180 = vmax.xlane.f32.xlu0 %v1179_v32 }
 0x96a   :  { %v1178_v33 = vpop.xlane.xlu0 %1177 }
 0x96b   :  { %v1182_v34 = vsub.f32 %v1166_v30, %v1178_v33 }
 0x96d   :  { %v1184_v35 = vmul.f32 1.442695, %v1182_v34 }
 0x96e   :  { %v1181_v36 = vpop.xlane.xlu0 %1180 }
 0x96f   :  { %1509 = vpow2.f32 %v1184_v35  ;;  %v1183_v37 = vsub.f32 %v1400_v45, %v1181_v36 }
 0x971   :  { %v1186_v7 = vmul.f32 1.442695, %v1183_v37 }
 0x973   :  { %1511 = vpow2.f32 %v1186_v7 }
 0x979   :  { %v1510_v38 = vpop.eup %1509 }
 0x97a   :  { %v1188_v10 = vsel %vm1175_vm6, %v1510_v38, 0.0 }
 0x97b   :  { %1189 = vadd.xlane.f32.xlu1 %v1188_v10 }
 0x97d   :  { %v1512_v39 = vpop.eup %1511 }
 0x97e   :  { %v1191_v4 = vsel %vm1175_vm6, %v1512_v39, 0.0 }
 0x97f   :  { %1192 = vadd.xlane.f32.xlu1 %v1191_v4 }
 0x980   :  { %1528 = shalt.err (!%p1525_p4)
}
 0x981   :  { %s1529_s13 = scalar_lea.hbm %s1854_s8, 256 }
 0x982   :  { %p1530_p5 = scmp.ne.s32.totalorder %s1854_s8, %s1529_s13  ;;  %p1533_p6 = scmp.lt.u32.totalorder %s1529_s13, %s1854_s8 }
 0x984   :  { %p1535_p7 = pnand %p1533_p6, %p1530_p5 }
 0x986   :  { %1538 = shalt.err (!%p1535_p7)
}
 0x987   :  { %s1570_s17 = smov 128   ;;  %s1571_s18 = smov 8  }
 0x988   :  { %1223 = dma.vmem_to_hbm [thread:$0]  %s1218_s9, 256, %s1854_s8, [#allocation6], %s1570_s17, %s1570_s17, %s1571_s18  }
 0x989   :  { %s1572_s21 = smov [#allocation3]  }
 0x98a   :  { %s1205_s0 = sshll.u32 %s1572_s21, 4  ;;  %s1206_s0 = int_to_ptr.vmem [resolvable:$true] %s1205_s0 }
 0x98b   :  { %s1539_s2 = scalar_lea.vmem %s1206_s0, 256  ;;  %p1544_p9 = scmp.lt.s32.totalorder %s1206_s0, %s1206_s0 }
 0x98c   :  { %p1540_p8 = scmp.ne.s32.totalorder %s1206_s0, %s1539_s2  ;;  %p1545_p10 = scmp.lt.s32.totalorder %s1539_s2, %s1539_s2 }
 0x98e   :  { %p1546_p11 = por %p1545_p10, %p1544_p9 }
 0x990   :  { %p1547_p12 = pnand %p1546_p11, %p1540_p8 }
 0xa08   :  { %v1190_v13 = vpop.xlane.xlu1 %1189 }
 0xa09   :  { %1513 = vrcp.f32 %v1190_v13 }
 0xa0c   :  { %v1193_v40 = vpop.xlane.xlu1 %1192 }
 0xa0d   :  { %1515 = vrcp.f32 %v1193_v40 }
 0xa13   :  { %v1514_v41 = vpop.eup %1513 }
 0xa14   :  { %v1196_v46 = vmul.f32 %v1514_v41, %v1510_v38 }
 0xa16   :  { %1198 = vst.msk [vmem:[#allocation3] sm:$0xff] %vm1175_vm6, %v1196_v46 }
 0xa17   :  { %v1516_v42 = vpop.eup %1515 }
 0xa18   :  { %v1197_v47 = vmul.f32 %v1516_v42, %v1512_v39 }
 0xa1a   :  { %1199 = vst.msk [vmem:[#allocation3 + $0x8] sm:$0xff] %vm1175_vm6, %v1197_v47 }
 0xa1b   :  { %1550 = shalt.err (!%p1547_p12)
}
 0xa1c   :  { %s1551_s22 = scalar_lea.hbm %s1853_s7, 256 }
 0xa1d   :  { %p1552_p13 = scmp.ne.s32.totalorder %s1853_s7, %s1551_s22  ;;  %p1555_p0 = scmp.lt.u32.totalorder %s1551_s22, %s1853_s7 }
 0xa1f   :  { %p1557_p1 = pnand %p1555_p0, %p1552_p13 }
 0xa21   :  { %1560 = shalt.err (!%p1557_p1)
}
 0xa22   :  { %1211 = dma.vmem_to_hbm [thread:$0]  %s1206_s0, 256, %s1853_s7, [#allocation4], %s1570_s17, %s1570_s17, %s1571_s18  }
 0xa23   :  { %1561 = dma.done.wait [#allocation4], 256  }
 0xa24   :  { %1562 = vsyncadd [#allocation4], 4294967040 }
 0xa25   :  { %1563 = dma.done.wait [#allocation6], 256  }
 0xa26   :  { %1564 = vsyncadd [#allocation6], 4294967040 }
 0xa27   :  { %1230 = vsyncpa [#allocation4], 1 }
 0xa28   :  { %1231 = vsyncpa [#allocation6], 1 }

</bundles_post_ra>
